<compile_context>
chip_gen: v7x
topology: tpu7x:2x2x1
jax: 0.10.0
libtpu: 0.0.40
codegen_flags: <defaults>
</compile_context>

<pallas_src>
import jax
import jax.numpy as jnp
from jax.experimental import pallas as pl
from jax.experimental.pallas import tpu as pltpu


def _l2norm_kernel(x_ref, scale_ref, o_ref):
    # x_ref:     (BN, C, T)  batch-pack x channels x spatial-position tile
    # scale_ref: (C, 1)      per-channel scale (f32, resident across steps)
    xf = x_ref[...].astype(jnp.float32)
    # Sum of squares over channels (axis=-2), accumulated in f32.
    ssq = jnp.sum(xf * xf, axis=-2, keepdims=True)          # (BN, 1, T)
    inv = jax.lax.rsqrt(jnp.maximum(ssq, 1e-12))            # clamp + rsqrt (EUP)
    # f32 multiplies, single cast at the store (reference-exact semantics).
    o_ref[...] = (scale_ref[...] * xf * inv).astype(o_ref.dtype)


def _cdiv(a, b):
    return -(-a // b)


def _round_up(a, m):
    return _cdiv(a, m) * m


def _tpu_vmem_bytes():
    try:
        return int(pltpu.get_tpu_info().vmem_capacity_bytes)
    except Exception:
        return 64 << 20  # conservative default: v7x per-TC VMEM


def _choose_tiling(N, C, HW, itemsize, target_block_bytes,
                   min_steps=4, min_block_bytes=1 << 20):
    """Return (bn, tile_hw, grid) for blocks of shape (bn, C, tile_hw)."""
    per_item = C * HW * itemsize

    if per_item <= target_block_bytes or HW < 256:
        # --- Batch-packing path (small / medium feature maps) ---------------
        bn = int(max(1, min(N, target_block_bytes // max(per_item, 1))))
        # Megacore: prefer >= min_steps total steps, but never shrink a block
        # below ~min_block_bytes just to manufacture extra steps.
        if _cdiv(N, bn) < min_steps:
            bn_steps = max(1, N // min(min_steps, N))
            if bn_steps < bn and bn_steps * per_item >= min_block_bytes:
                bn = bn_steps
        # Prefer a bn that divides N (avoids a ragged tail block on the batch
        # dim) as long as it stays within ~2x of the byte target.
        if N % bn != 0:
            d = bn
            while d > 1 and N % d != 0:
                d -= 1
            if 2 * d >= bn:
                bn = d
        return bn, HW, (_cdiv(N, bn), 1)

    # --- HW-splitting path (large feature maps) -----------------------------
    max_tile = max(128, (target_block_bytes // (C * itemsize)) // 128 * 128)
    grid_hw = _cdiv(HW, max_tile)
    # Balanced tiles: derive the tile from the step count, not the byte target
    # (avoids a full tile + tiny sliver tail).
    tile_hw = max(128, _round_up(_cdiv(HW, grid_hw), 128))
    grid_hw = _cdiv(HW, tile_hw)
    # Megacore: guarantee enough steps for both v7x TensorCores.
    if N * grid_hw < min_steps:
        want = _cdiv(min_steps, N)
        if HW >= want * 128:
            tile_hw = max(128, _round_up(_cdiv(HW, want), 128))
            grid_hw = _cdiv(HW, tile_hw)
    return 1, tile_hw, (N, grid_hw)


def l2norm(data, scale, *, target_block_bytes=None):
    """data: (N, C, H, W) float array.  scale: (C,) per-channel scale."""
    N, C, H, W = data.shape
    HW = H * W
    itemsize = jnp.dtype(data.dtype).itemsize

    vmem_total = _tpu_vmem_bytes()
    big_vmem = vmem_total >= (100 << 20)          # v5e / v6e (128 MiB VMEM)
    if target_block_bytes is None:
        target_block_bytes = (8 << 20) if big_vmem else (4 << 20)

    # Free reshapes only -- no HBM transposes.  Pre-cast scale once so the
    # resident scale block needs no per-step convert.
    x3d = data.reshape(N, C, HW)
    scale2d = scale.astype(jnp.float32).reshape(C, 1)

    bn, tile_hw, grid = _choose_tiling(N, C, HW, itemsize, target_block_bytes)

    # Double-buffered in + out (+ tiny scale).  Cap generation-gated: stay
    # inside v7x's 64 MiB per-TC VMEM, use the headroom on 128 MiB parts.
    block_bytes = bn * C * tile_hw * itemsize
    vmem_cap = (96 << 20) if big_vmem else (48 << 20)
    vmem_limit = int(min(vmem_cap, max(32 << 20, 8 * block_bytes)))

    cost = pl.CostEstimate(
        flops=int(4 * N * C * HW),
        transcendentals=int(N * HW),
        bytes_accessed=int(2 * N * C * HW * itemsize + C * 4),
    )

    out3d = pl.pallas_call(
        _l2norm_kernel,
        out_shape=jax.ShapeDtypeStruct((N, C, HW), data.dtype),
        grid_spec=pltpu.PrefetchScalarGridSpec(
            num_scalar_prefetch=0,
            grid=grid,
            in_specs=[
                pl.BlockSpec((bn, C, tile_hw), lambda n, j: (n, 0, j)),
                pl.BlockSpec((C, 1), lambda n, j: (0, 0)),
            ],
            out_specs=pl.BlockSpec((bn, C, tile_hw), lambda n, j: (n, 0, j)),
        ),
        compiler_params=pltpu.CompilerParams(
            dimension_semantics=("parallel", "parallel"),
            vmem_limit_bytes=vmem_limit,
        ),
        cost_estimate=cost,
    )(x3d, scale2d)

    return out3d.reshape(N, C, H, W)


def l2norm_ref(data, scale):
    # Pure-JAX reference matching the PyTorch forward exactly.
    s = scale.reshape(1, -1, 1, 1)
    ssq = jnp.sum(data * data, axis=1, keepdims=True)
    return s * data * jax.lax.rsqrt(jnp.maximum(ssq, 1e-12))


if __name__ == "__main__":
    # Small shapes consistent with the module: batch=2, channels=4, spatial=16.
    N, C, H, W = 2, 4, 16, 16
    key = jax.random.PRNGKey(0)
    x = jax.random.normal(key, (N, C, H, W), dtype=jnp.float32)

    # Deterministic parameter init, as in __init__: scale=20 for every channel.
    scale = jnp.full((C,), 20.0, dtype=jnp.float32)

    out = l2norm(x, scale)
    out = jax.block_until_ready(out)

    ref = l2norm_ref(x, scale)
    assert out.shape == (N, C, H, W)
    assert jnp.allclose(out, ref, atol=1e-5, rtol=1e-5)

    print("KERNEL_OK")
</pallas_src>

<mosaic_0001>
module attributes {stable_mosaic.version = 11 : i64} {
  func.func @_l2norm_kernel(%arg0: i32, %arg1: i32, %arg2: memref<2x4x256xf32, #tpu.memory_space<vmem>>, %arg3: memref<4x1xf32, #tpu.memory_space<vmem>>, %arg4: memref<2x4x256xf32, #tpu.memory_space<vmem>>) attributes {dimension_semantics = [#tpu.dimension_semantics<parallel>, #tpu.dimension_semantics<parallel>], iteration_bounds = array<i64: 1, 1>, scalar_prefetch = 0 : i64, scratch_operands = 0 : i64, tpu.core_type = #tpu.core_type<tc>, window_params = [{transform_indices = @transform_0, window_bounds = array<i64: 2, 4, 256>}, {pipeline_mode = #tpu.pipeline_mode<synchronous>, transform_indices = @transform_1, window_bounds = array<i64: 4, 1>}, {transform_indices = @transform_2, window_bounds = array<i64: 2, 4, 256>}]} {
    %c0 = arith.constant 0 : index
    %c0_0 = arith.constant 0 : index
    %c0_1 = arith.constant 0 : index
    %0 = vector.load %arg2[%c0, %c0_0, %c0_1] : memref<2x4x256xf32, #tpu.memory_space<vmem>>, vector<2x4x256xf32>
    %1 = arith.mulf %0, %0 : vector<2x4x256xf32>
    %cst = arith.constant dense<0.000000e+00> : vector<2x256xf32>
    %2 = vector.multi_reduction <add>, %1, %cst [1] : vector<2x4x256xf32> to vector<2x256xf32>
    %3 = vector.shape_cast %2 : vector<2x256xf32> to vector<2x1x256xf32>
    %cst_2 = arith.constant 9.99999996E-13 : f32
    %4 = vector.broadcast %cst_2 : f32 to vector<2x1x256xf32>
    %5 = arith.maximumf %3, %4 : vector<2x1x256xf32>
    %6 = math.rsqrt %5 : vector<2x1x256xf32>
    %c0_3 = arith.constant 0 : index
    %c0_4 = arith.constant 0 : index
    %7 = vector.load %arg3[%c0_3, %c0_4] : memref<4x1xf32, #tpu.memory_space<vmem>>, vector<4x1xf32>
    %8 = vector.shape_cast %7 : vector<4x1xf32> to vector<1x4x1xf32>
    %9 = vector.broadcast %8 : vector<1x4x1xf32> to vector<2x4x256xf32>
    %10 = arith.mulf %9, %0 : vector<2x4x256xf32>
    %11 = vector.broadcast %6 : vector<2x1x256xf32> to vector<2x4x256xf32>
    %12 = arith.mulf %10, %11 : vector<2x4x256xf32>
    %c0_5 = arith.constant 0 : index
    %c0_6 = arith.constant 0 : index
    %c0_7 = arith.constant 0 : index
    %13 = vector.load %arg4[%c0_5, %c0_6, %c0_7] : memref<2x4x256xf32, #tpu.memory_space<vmem>>, vector<2x4x256xf32>
    tpu.vector_store %arg4[%c0_5, %c0_6, %c0_7], %12 {strides = array<i32>} : memref<2x4x256xf32, #tpu.memory_space<vmem>>, vector<2x4x256xf32>,
    return
  }
  func.func @transform_0(%arg0: i32, %arg1: i32) -> (i32, i32, i32) {
    %c0_i32 = arith.constant 0 : i32
    %c0_i32_0 = arith.constant 0 : i32
    return %arg0, %c0_i32, %arg1 : i32, i32, i32
  }
  func.func @transform_1(%arg0: i32, %arg1: i32) -> (i32, i32) {
    %c0_i32 = arith.constant 0 : i32
    %c0_i32_0 = arith.constant 0 : i32
    %c0_i32_1 = arith.constant 0 : i32
    return %c0_i32, %c0_i32_0 : i32, i32
  }
  func.func @transform_2(%arg0: i32, %arg1: i32) -> (i32, i32, i32) {
    %c0_i32 = arith.constant 0 : i32
    %c0_i32_0 = arith.constant 0 : i32
    return %arg0, %c0_i32, %arg1 : i32, i32, i32
  }
}

</mosaic_0001>

<bundles_post_ra>
// kernel: tpu_custom_call.1
= control target key start
LH: loop header
LB: loop body
LE: loop exit
PB: predicated region body
PF: predicated region fallthrough
CT: control target
= control target key end

     0   :  { %7 = vsyncpa [#allocation3], 0  ;;  %s237_s0 = inlined_call_operand.hbm [shape: f32[2,4,256], index: 0, kind: input, shape index: {}]   ;;  %s238_s1 = inlined_call_operand.vmem [shape: f32[4,1], index: 1, kind: input, shape index: {}]   ;;  %s239_s2 = inlined_call_operand.hbm [shape: f32[2,4,256], index: 2, kind: output, shape index: {}]  }
   0x1   :  { %8 = vsyncpa [#allocation4], 0  ;;  %s184_s9 = smov [#allocation2]   ;;  %s136_s13 = scalar_lea.hbm %s237_s0, 256 }
   0x2   :  { %s14_s10 = sshll.u32 %s184_s9, 4  ;;  %p137_p0 = scmp.ne.s32.totalorder %s237_s0, %s136_s13  ;;  %s15_s10 = int_to_ptr.vmem [resolvable:$true] %s14_s10 }
   0x3   :  { %p140_p1 = scmp.lt.u32.totalorder %s136_s13, %s237_s0 }
   0x5   :  { %p142_p2 = pnand %p140_p1, %p137_p0 }
   0x7   :  { %145 = shalt.err (!%p142_p2)
}
   0x8   :  { %s146_s18 = scalar_lea.vmem %s15_s10, 256  ;;  %p151_p4 = scmp.lt.s32.totalorder %s15_s10, %s15_s10 }
   0x9   :  { %p147_p3 = scmp.ne.s32.totalorder %s15_s10, %s146_s18  ;;  %p152_p5 = scmp.lt.s32.totalorder %s146_s18, %s146_s18 }
   0xb   :  { %p153_p6 = por %p152_p5, %p151_p4 }
   0xd   :  { %p154_p7 = pnand %p153_p6, %p147_p3 }
   0xf   :  { %157 = shalt.err (!%p154_p7)
}
  0x10   :  { %s185_s19 = smov 128   ;;  %s186_s20 = smov 8  }
  0x11   :  { %20 = dma.hbm_to_vmem [thread:$0]  %s237_s0, 256, %s15_s10, [#allocation3], %s185_s19, %s185_s19, %s186_s20  }
  0x12   :  { %180 = dma.done.wait [#allocation3], 256  }
  0x13   :  { %181 = vsyncadd [#allocation3], 4294967040  ;;  %v187_v0 = vmov 0   ;;  %v73_v1 = vld [vmem:[%s238_s1] sm:$0xf]  ;;  %v27_v3 = vld [vmem:[#allocation2 + $0x8] sm:$0xff] }
  0x14   :  { %125 = vset.pattern.permute.xlu0 %v187_v0  ;;  %v26_v2 = vld [vmem:[#allocation2] sm:$0xff]  ;;  %v29_v5 = vmul.f32 %v27_v3, %v27_v3  ;;  %vm36_vm0 = vcmask 1043456   ;;  %v82_v42 = vcombine.high %v27_v3, %v27_v3  ;;  %s188_s0 = smov [#allocation5]  }
  0x15   :  { %76 = vperm.xlu0 %125, %v73_v1   ;;  %v28_v4 = vmul.f32 %v26_v2, %v26_v2  ;;  %v81_v41 = vcombine.high %v26_v2, %v26_v2  ;;  %s108_s1 = sshll.u32 %s188_s0, 4  ;;  %s109_s1 = int_to_ptr.vmem [resolvable:$true] %s108_s1 }
  0x16   :  { %v33_v7 = vcombine.high %v29_v5, %v29_v5  ;;  %v51_v9 = vsel %vm36_vm0, %v29_v5, 0.0  ;;  %s158_s25 = scalar_lea.vmem %s109_s1, 256  ;;  %p163_p9 = scmp.lt.s32.totalorder %s109_s1, %s109_s1 }
  0x17   :  { %v32_v6 = vcombine.high %v28_v4, %v28_v4  ;;  %v37_v8 = vsel %vm36_vm0, %v28_v4, 0.0  ;;  %v52_v13 = vrot.slane %v51_v9, 4  ;;  %p159_p8 = scmp.ne.s32.totalorder %s109_s1, %s158_s25  ;;  %p164_p10 = scmp.lt.s32.totalorder %s158_s25, %s158_s25 }
  0x18   :  { %v38_v11 = vrot.slane %v37_v8, 4  ;;  %v58_v12 = vsel %vm36_vm0, %v33_v7, 0.0 }
  0x19   :  { %v44_v10 = vsel %vm36_vm0, %v32_v6, 0.0  ;;  %v59_v15 = vrot.slane %v58_v12, 4  ;;  %v53_v17 = vadd.f32 %v52_v13, %v51_v9  ;;  %p165_p11 = por %p164_p10, %p163_p9 }
  0x1a   :  { %v45_v14 = vrot.slane %v44_v10, 4  ;;  %v39_v16 = vadd.f32 %v38_v11, %v37_v8 }
  0x1b   :  { %v60_v19 = vadd.f32 %v59_v15, %v58_v12  ;;  %v54_v21 = vrot.slane %v53_v17, 2  ;;  %p166_p12 = pnand %p165_p11, %p159_p8 }
  0x1c   :  { %v46_v18 = vadd.f32 %v45_v14, %v44_v10  ;;  %v40_v20 = vrot.slane %v39_v16, 2 }
  0x1d   :  { %v61_v23 = vrot.slane %v60_v19, 2  ;;  %v55_v25 = vadd.f32 %v54_v21, %v53_v17 }
  0x1e   :  { %v47_v22 = vrot.slane %v46_v18, 2  ;;  %v41_v24 = vadd.f32 %v40_v20, %v39_v16 }
  0x1f   :  { %v62_v27 = vadd.f32 %v61_v23, %v60_v19  ;;  %v56_v29 = vrot.slane %v55_v25, 1 }
  0x20   :  { %v48_v26 = vadd.f32 %v47_v22, %v46_v18  ;;  %v42_v28 = vrot.slane %v41_v24, 1 }
  0x21   :  { %v63_v31 = vrot.slane %v62_v27, 1  ;;  %v57_v33 = vadd.f32 %v56_v29, %v55_v25 }
  0x22   :  { %v49_v30 = vrot.slane %v48_v26, 1  ;;  %v43_v32 = vadd.f32 %v42_v28, %v41_v24 }
  0x23   :  { %v64_v35 = vadd.f32 %v63_v31, %v62_v27  ;;  %v67_v37 = vmax.f32 %v57_v33, 1e-12 }
  0x24   :  { %v50_v34 = vadd.f32 %v49_v30, %v48_v26  ;;  %v65_v36 = vmax.f32 %v43_v32, 1e-12 }
  0x25   :  { %v68_v39 = vmax.f32 %v64_v35, 1e-12 }
  0x26   :  { %v66_v38 = vmax.f32 %v50_v34, 1e-12  ;;  %128 = vrsqrt.f32 %v65_v36 }
  0x27   :  { %130 = vrsqrt.f32 %v67_v37 }
  0x28   :  { %132 = vrsqrt.f32 %v66_v38 }
  0x29   :  { %134 = vrsqrt.f32 %v68_v39 }
  0x30   :  { %v129_v40 = vpop.eup %128 }
  0x31   :  { %v131_v43 = vpop.eup %130 }
  0x32   :  { %v133_v44 = vpop.eup %132 }
  0x33   :  { %v135_v45 = vpop.eup %134 }
  0x94   :  { %v77_v46 = vpop.permute.xlu0 %76 }
  0x95   :  { %v85_v47 = vmul.f32 %v77_v46, %v26_v2  ;;  %v86_v48 = vmul.f32 %v81_v41, %v77_v46  ;;  %v87_v49 = vmul.f32 %v77_v46, %v27_v3  ;;  %v88_v50 = vmul.f32 %v82_v42, %v77_v46 }
  0x97   :  { %v89_v51 = vmul.f32 %v129_v40, %v85_v47  ;;  %v90_v52 = vmul.f32 %v133_v44, %v86_v48  ;;  %v91_v53 = vmul.f32 %v131_v43, %v87_v49  ;;  %v92_v54 = vmul.f32 %v135_v45, %v88_v50 }
  0x99   :  { %v97_v55 = vcombine.low %v89_v51, %v90_v52  ;;  %v98_v56 = vcombine.low %v91_v53, %v92_v54 }
  0x9b   :  { %101 = vst [vmem:[#allocation5] sm:$0xff] %v97_v55  ;;  %102 = vst [vmem:[#allocation5 + $0x8] sm:$0xff] %v98_v56 }
  0x9c   :  { %169 = shalt.err (!%p166_p12)
}
  0x9d   :  { %s170_s28 = scalar_lea.hbm %s239_s2, 256 }
  0x9e   :  { %p171_p13 = scmp.ne.s32.totalorder %s239_s2, %s170_s28  ;;  %p174_p0 = scmp.lt.u32.totalorder %s170_s28, %s239_s2 }
  0xa0   :  { %p176_p1 = pnand %p174_p0, %p171_p13 }
  0xa2   :  { %179 = shalt.err (!%p176_p1)
}
  0xa3   :  { %114 = dma.vmem_to_hbm [thread:$0]  %s109_s1, 256, %s239_s2, [#allocation4], %s185_s19, %s185_s19, %s186_s20  }
  0xa4   :  { %182 = dma.done.wait [#allocation4], 256  }
  0xa5   :  { %183 = vsyncadd [#allocation4], 4294967040 }
  0xa6   :  { %118 = vsyncpa [#allocation3], 1 }
  0xa7   :  { %119 = vsyncpa [#allocation4], 1 }

</bundles_post_ra>
